<compile_context>
chip_gen: v6e
topology: v6e:2x2x1
jax: 0.10.0
libtpu: 0.0.40
codegen_flags: <defaults>
</compile_context>

<pallas_src>
import functools

import jax
import jax.numpy as jnp
from jax import lax
from jax.experimental import pallas as pl
from jax.experimental.pallas import tpu as pltpu

EPS = 1e-5

# Independent per-pass block byte targets (see header).
_P1_TILE_BYTES = 12 * 1024 * 1024   # pass 1: only the input is double-buffered
_P2_TILE_BYTES = 6 * 1024 * 1024    # pass 2: in + out double-buffered + f32 temp
_P1_MAX_LANES = 2048                # bounds the unrolled lane-chunk loop (<=16)
_P2_MAX_LANES = 8192
_VMEM_CAP = 48 << 20                # v7x-safe (64 MiB/TC physical)


def _round_up(x, m):
    return ((x + m - 1) // m) * m


def _pick_tiles(n, c, hw, itemsize, target_bytes, max_lanes):
    """Choose (nb, hw_tile): hw_tile a multiple of 128 (cdiv + mask covers any
    HW), rebalanced so the masked tail is small; nb a divisor of n keeping the
    block near the byte target."""
    hw_pad = _round_up(hw, 128)
    by_bytes = max(128, (target_bytes // max(1, c * itemsize)) // 128 * 128)
    hw_tile = max(128, min(hw_pad, max_lanes, by_bytes))
    # Spread HW evenly over the cdiv blocks (still a multiple of 128).
    nj = -(-hw // hw_tile)
    hw_tile = max(128, min(hw_pad, _round_up(-(-hw // nj), 128)))
    # Batch rows per block: largest divisor of n within the byte target.
    max_nb = max(1, target_bytes // max(1, c * hw_tile * itemsize))
    nb = 1
    for d in range(1, n + 1):
        if n % d == 0 and d <= max_nb:
            nb = d
    return nb, hw_tile


def _stats_kernel(x_ref, sum_ref, sq_ref, *, hw, hw_tile):
    """Accumulate lane-wide (C, 128) partial sum / sum-of-squares per group."""
    @pl.when(jnp.logical_and(pl.program_id(1) == 0, pl.program_id(2) == 0))
    def _():
        sum_ref[...] = jnp.zeros_like(sum_ref)
        sq_ref[...] = jnp.zeros_like(sq_ref)

    j = pl.program_id(2)
    needs_mask = (hw % hw_tile) != 0            # static
    ps = jnp.zeros(sum_ref.shape, jnp.float32)  # (C, 128)
    pq = jnp.zeros(sq_ref.shape, jnp.float32)
    # Statically unrolled walk over 128-lane chunks: partial sums stay
    # lane-wide (pure VPU adds); the cross-lane reduce is deferred to pass 2.
    for t in range(hw_tile // 128):
        c = x_ref[:, :, pl.ds(t * 128, 128)].astype(jnp.float32)  # (nb, C, 128)
        if needs_mask:
            lane = lax.broadcasted_iota(jnp.int32, (1, 1, 128), 2)
            valid = (j * hw_tile + t * 128 + lane) < hw
            c = jnp.where(valid, c, 0.0)        # zero padded lanes
        ps = ps + jnp.sum(c, axis=0)            # leading-dim reduce: vreg adds
        pq = pq + jnp.sum(c * c, axis=0)
    sum_ref[...] += ps
    sq_ref[...] += pq


def _norm_kernel(x_ref, sum_ref, sq_ref, gam_ref, bet_ref, o_ref, *, count):
    """y = x * a + b with (a, b) folded from this group's stats + affine."""
    inv_cnt = jnp.float32(1.0 / count)
    s = jnp.sum(sum_ref[...], axis=1, keepdims=True)    # (C, 1), tiny XLU
    sq = jnp.sum(sq_ref[...], axis=1, keepdims=True)
    mean = s * inv_cnt
    # TODO(synk): one-pass E[x^2]-mean^2 can lose precision when |mean|>>std
    # over very large N*H*W; add a pilot offset / compensated sums if needed.
    var = jnp.maximum(sq * inv_cnt - mean * mean, 0.0)  # biased variance
    a = gam_ref[...] * lax.rsqrt(var + EPS)             # (C, 1)
    b = bet_ref[...] - mean * a
    y = x_ref[...].astype(jnp.float32) * a[None] + b[None]
    o_ref[...] = y.astype(o_ref.dtype)


def dsbn2d_train(x, gamma_s, beta_s, gamma_t, beta_t):
    """Training-mode DSBN2d forward. x: (B, C, H, W); params: (C,)."""
    B, C, H, W = x.shape
    assert B % 2 == 0
    G, N, HW = 2, B // 2, H * W

    # Pure reshape (no transpose, no extra HBM pass): (G, N, C, HW).
    x_rows = x.reshape(G, N, C, HW)
    itemsize = jnp.dtype(x.dtype).itemsize

    # ---- Pass 1: per-group, per-channel lane-wide partial sums ----
    nb1, hw1 = _pick_tiles(N, C, HW, itemsize, _P1_TILE_BYTES, _P1_MAX_LANES)
    grid1 = (G, N // nb1, pl.cdiv(HW, hw1))
    blk1 = nb1 * C * hw1 * itemsize
    stat_bytes = 2 * 2 * C * 128 * 4           # two (C,128) f32 outs, 2 bufs
    vmem1 = int(min(max(2 * blk1 + stat_bytes + (4 << 20), 16 << 20), _VMEM_CAP))

    x_spec1 = pl.BlockSpec((None, nb1, C, hw1), lambda g, n, j: (g, n, 0, j))
    stat_spec = pl.BlockSpec((None, C, 128), lambda g, n, j: (g, 0, 0))

    sums, sqs = pl.pallas_call(
        functools.partial(_stats_kernel, hw=HW, hw_tile=hw1),
        out_shape=(jax.ShapeDtypeStruct((G, C, 128), jnp.float32),
                   jax.ShapeDtypeStruct((G, C, 128), jnp.float32)),
        grid=grid1,
        in_specs=[x_spec1],
        out_specs=(stat_spec, stat_spec),
        compiler_params=pltpu.CompilerParams(
            dimension_semantics=("parallel", "arbitrary", "arbitrary"),
            vmem_limit_bytes=vmem1),
    )(x_rows)

    # Tiny per-group affine params (stacking only; folding happens in-kernel).
    gammas = jnp.stack([gamma_s, gamma_t]).astype(jnp.float32).reshape(G, C, 1)
    betas = jnp.stack([beta_s, beta_t]).astype(jnp.float32).reshape(G, C, 1)

    # ---- Pass 2: fully parallel y = x * a + b (lane-dense stores) ----
    nb2, hw2 = _pick_tiles(N, C, HW, itemsize, _P2_TILE_BYTES, _P2_MAX_LANES)
    grid2 = (G, N // nb2, pl.cdiv(HW, hw2))
    blk2 = nb2 * C * hw2 * itemsize
    small = 2 * 2 * C * 128 * 4 + 2 * 2 * C * 4
    # 4 live pipeline blocks + ~1 block of f32 temporaries + small inputs.
    vmem2 = int(min(max(5 * blk2 + small + (4 << 20), 16 << 20), _VMEM_CAP))

    x_spec2 = pl.BlockSpec((None, nb2, C, hw2), lambda g, n, j: (g, n, 0, j))
    vec_spec = pl.BlockSpec((None, C, 128), lambda g, n, j: (g, 0, 0))
    par_spec = pl.BlockSpec((None, C, 1), lambda g, n, j: (g, 0, 0))

    out_rows = pl.pallas_call(
        functools.partial(_norm_kernel, count=float(N * HW)),
        out_shape=jax.ShapeDtypeStruct((G, N, C, HW), x.dtype),
        grid=grid2,
        in_specs=[x_spec2, vec_spec, vec_spec, par_spec, par_spec],
        out_specs=x_spec2,
        compiler_params=pltpu.CompilerParams(
            dimension_semantics=("parallel", "parallel", "parallel"),
            vmem_limit_bytes=vmem2),
    )(x_rows, sums, sqs, gammas, betas)

    return out_rows.reshape(B, C, H, W)


def _reference(x, gamma_s, beta_s, gamma_t, beta_t):
    B, C, H, W = x.shape

    def bn(h, g, b):
        hf = h.astype(jnp.float32)
        m = hf.mean(axis=(0, 2, 3), keepdims=True)
        v = ((hf - m) ** 2).mean(axis=(0, 2, 3), keepdims=True)
        y = (hf - m) / jnp.sqrt(v + EPS)
        return y * g.reshape(1, C, 1, 1) + b.reshape(1, C, 1, 1)

    h1, h2 = x[: B // 2], x[B // 2:]
    out = jnp.concatenate(
        [bn(h1, gamma_s, beta_s), bn(h2, gamma_t, beta_t)], axis=0)
    return out.astype(x.dtype)


if __name__ == "__main__":
    planes = 4
    B, H, W = 4, 16, 16   # B even -> two halves of 2

    x = jax.random.normal(jax.random.PRNGKey(0), (B, planes, H, W),
                          dtype=jnp.float32)

    # PyTorch default init is gamma=1, beta=0; perturb deterministically so the
    # two BN branches (BN_S vs BN_T) are distinguishable.
    c = jnp.arange(planes, dtype=jnp.float32)
    gamma_s = jnp.ones((planes,), jnp.float32) + 0.10 * c
    beta_s = 0.05 * c
    gamma_t = jnp.ones((planes,), jnp.float32) - 0.05 * c
    beta_t = -0.02 * c

    out = dsbn2d_train(x, gamma_s, beta_s, gamma_t, beta_t)
    out = jax.block_until_ready(out)

    ref = _reference(x, gamma_s, beta_s, gamma_t, beta_t)
    assert out.shape == (B, planes, H, W)
    assert jnp.max(jnp.abs(out.astype(jnp.float32) -
                           ref.astype(jnp.float32))) < 2e-4

    print("KERNEL_OK")
</pallas_src>

<mosaic_0001>
module attributes {stable_mosaic.version = 11 : i64} {
  func.func @_stats_kernel(%arg0: i32, %arg1: i32, %arg2: i32, %arg3: memref<1x2x4x256xf32, #tpu.memory_space<vmem>>, %arg4: memref<1x4x128xf32, #tpu.memory_space<vmem>>, %arg5: memref<1x4x128xf32, #tpu.memory_space<vmem>>) attributes {dimension_semantics = [#tpu.dimension_semantics<parallel>, #tpu.dimension_semantics<arbitrary>, #tpu.dimension_semantics<arbitrary>], iteration_bounds = array<i64: 2, 1, 1>, scalar_prefetch = 0 : i64, scratch_operands = 0 : i64, tpu.core_type = #tpu.core_type<tc>, window_params = [{transform_indices = @transform_0, window_bounds = array<i64: 1, 2, 4, 256>}, {transform_indices = @transform_1, window_bounds = array<i64: 1, 4, 128>}, {transform_indices = @transform_2, window_bounds = array<i64: 1, 4, 128>}]} {
    %c0_i32 = arith.constant 0 : i32
    %0 = arith.cmpi eq, %arg1, %c0_i32 : i32
    %c0_i32_0 = arith.constant 0 : i32
    %1 = arith.cmpi eq, %arg2, %c0_i32_0 : i32
    %2 = arith.andi %0, %1 : i1
    %3 = arith.extui %2 : i1 to i32
    %c0_i32_1 = arith.constant 0 : i32
    %4 = arith.cmpi ne, %3, %c0_i32_1 : i32
    scf.if %4 {
      %cst_25 = arith.constant 0.000000e+00 : f32
      %33 = vector.broadcast %cst_25 : f32 to vector<4x128xf32>
      %c0_26 = arith.constant 0 : index
      %c0_27 = arith.constant 0 : index
      %c0_28 = arith.constant 0 : index
      %34 = vector.load %arg4[%c0_26, %c0_27, %c0_28] : memref<1x4x128xf32, #tpu.memory_space<vmem>>, vector<1x4x128xf32>
      %35 = vector.shape_cast %34 : vector<1x4x128xf32> to vector<4x128xf32>
      %36 = vector.shape_cast %33 : vector<4x128xf32> to vector<1x4x128xf32>
      tpu.vector_store %arg4[%c0_26, %c0_27, %c0_28], %36 {strides = array<i32>} : memref<1x4x128xf32, #tpu.memory_space<vmem>>, vector<1x4x128xf32>,
      %cst_29 = arith.constant 0.000000e+00 : f32
      %37 = vector.broadcast %cst_29 : f32 to vector<4x128xf32>
      %c0_30 = arith.constant 0 : index
      %c0_31 = arith.constant 0 : index
      %c0_32 = arith.constant 0 : index
      %38 = vector.load %arg5[%c0_30, %c0_31, %c0_32] : memref<1x4x128xf32, #tpu.memory_space<vmem>>, vector<1x4x128xf32>
      %39 = vector.shape_cast %38 : vector<1x4x128xf32> to vector<4x128xf32>
      %40 = vector.shape_cast %37 : vector<4x128xf32> to vector<1x4x128xf32>
      tpu.vector_store %arg5[%c0_30, %c0_31, %c0_32], %40 {strides = array<i32>} : memref<1x4x128xf32, #tpu.memory_space<vmem>>, vector<1x4x128xf32>,
    } else {
    }
    %cst = arith.constant 0.000000e+00 : f32
    %5 = vector.broadcast %cst : f32 to vector<4x128xf32>
    %cst_2 = arith.constant 0.000000e+00 : f32
    %6 = vector.broadcast %cst_2 : f32 to vector<4x128xf32>
    %c0 = arith.constant 0 : index
    %c0_3 = arith.constant 0 : index
    %c0_4 = arith.constant 0 : index
    %c0_5 = arith.constant 0 : index
    %7 = vector.load %arg3[%c0, %c0_3, %c0_4, %c0_5] : memref<1x2x4x256xf32, #tpu.memory_space<vmem>>, vector<1x2x4x128xf32>
    %8 = vector.shape_cast %7 : vector<1x2x4x128xf32> to vector<2x4x128xf32>
    %cst_6 = arith.constant dense<0.000000e+00> : vector<4x128xf32>
    %9 = vector.multi_reduction <add>, %8, %cst_6 [0] : vector<2x4x128xf32> to vector<4x128xf32>
    %10 = arith.addf %5, %9 : vector<4x128xf32>
    %11 = arith.mulf %8, %8 : vector<2x4x128xf32>
    %cst_7 = arith.constant dense<0.000000e+00> : vector<4x128xf32>
    %12 = vector.multi_reduction <add>, %11, %cst_7 [0] : vector<2x4x128xf32> to vector<4x128xf32>
    %13 = arith.addf %6, %12 : vector<4x128xf32>
    %c0_8 = arith.constant 0 : index
    %c0_9 = arith.constant 0 : index
    %c0_10 = arith.constant 0 : index
    %c128 = arith.constant 128 : index
    %14 = vector.load %arg3[%c0_8, %c0_9, %c0_10, %c128] : memref<1x2x4x256xf32, #tpu.memory_space<vmem>>, vector<1x2x4x128xf32>
    %15 = vector.shape_cast %14 : vector<1x2x4x128xf32> to vector<2x4x128xf32>
    %cst_11 = arith.constant dense<0.000000e+00> : vector<4x128xf32>
    %16 = vector.multi_reduction <add>, %15, %cst_11 [0] : vector<2x4x128xf32> to vector<4x128xf32>
    %17 = arith.addf %10, %16 : vector<4x128xf32>
    %18 = arith.mulf %15, %15 : vector<2x4x128xf32>
    %cst_12 = arith.constant dense<0.000000e+00> : vector<4x128xf32>
    %19 = vector.multi_reduction <add>, %18, %cst_12 [0] : vector<2x4x128xf32> to vector<4x128xf32>
    %20 = arith.addf %13, %19 : vector<4x128xf32>
    %c0_13 = arith.constant 0 : index
    %c0_14 = arith.constant 0 : index
    %c0_15 = arith.constant 0 : index
    %21 = vector.load %arg4[%c0_13, %c0_14, %c0_15] : memref<1x4x128xf32, #tpu.memory_space<vmem>>, vector<1x4x128xf32>
    %22 = vector.shape_cast %21 : vector<1x4x128xf32> to vector<4x128xf32>
    %23 = arith.addf %22, %17 : vector<4x128xf32>
    %c0_16 = arith.constant 0 : index
    %c0_17 = arith.constant 0 : index
    %c0_18 = arith.constant 0 : index
    %24 = vector.load %arg4[%c0_16, %c0_17, %c0_18] : memref<1x4x128xf32, #tpu.memory_space<vmem>>, vector<1x4x128xf32>
    %25 = vector.shape_cast %24 : vector<1x4x128xf32> to vector<4x128xf32>
    %26 = vector.shape_cast %23 : vector<4x128xf32> to vector<1x4x128xf32>
    tpu.vector_store %arg4[%c0_16, %c0_17, %c0_18], %26 {strides = array<i32>} : memref<1x4x128xf32, #tpu.memory_space<vmem>>, vector<1x4x128xf32>,
    %c0_19 = arith.constant 0 : index
    %c0_20 = arith.constant 0 : index
    %c0_21 = arith.constant 0 : index
    %27 = vector.load %arg5[%c0_19, %c0_20, %c0_21] : memref<1x4x128xf32, #tpu.memory_space<vmem>>, vector<1x4x128xf32>
    %28 = vector.shape_cast %27 : vector<1x4x128xf32> to vector<4x128xf32>
    %29 = arith.addf %28, %20 : vector<4x128xf32>
    %c0_22 = arith.constant 0 : index
    %c0_23 = arith.constant 0 : index
    %c0_24 = arith.constant 0 : index
    %30 = vector.load %arg5[%c0_22, %c0_23, %c0_24] : memref<1x4x128xf32, #tpu.memory_space<vmem>>, vector<1x4x128xf32>
    %31 = vector.shape_cast %30 : vector<1x4x128xf32> to vector<4x128xf32>
    %32 = vector.shape_cast %29 : vector<4x128xf32> to vector<1x4x128xf32>
    tpu.vector_store %arg5[%c0_22, %c0_23, %c0_24], %32 {strides = array<i32>} : memref<1x4x128xf32, #tpu.memory_space<vmem>>, vector<1x4x128xf32>,
    return
  }
  func.func @transform_0(%arg0: i32, %arg1: i32, %arg2: i32) -> (i32, i32, i32, i32) {
    %c0_i32 = arith.constant 0 : i32
    %c0_i32_0 = arith.constant 0 : i32
    return %arg0, %arg1, %c0_i32, %arg2 : i32, i32, i32, i32
  }
  func.func @transform_1(%arg0: i32, %arg1: i32, %arg2: i32) -> (i32, i32, i32) {
    %c0_i32 = arith.constant 0 : i32
    %c0_i32_0 = arith.constant 0 : i32
    %c0_i32_1 = arith.constant 0 : i32
    return %arg0, %c0_i32, %c0_i32_0 : i32, i32, i32
  }
  func.func @transform_2(%arg0: i32, %arg1: i32, %arg2: i32) -> (i32, i32, i32) {
    %c0_i32 = arith.constant 0 : i32
    %c0_i32_0 = arith.constant 0 : i32
    %c0_i32_1 = arith.constant 0 : i32
    return %arg0, %c0_i32, %c0_i32_0 : i32, i32, i32
  }
}

</mosaic_0001>

<bundles_post_ra>
// kernel: tpu_custom_call.1
= control target key start
LH: loop header
LB: loop body
LE: loop exit
PB: predicated region body
PF: predicated region fallthrough
CT: control target
= control target key end

     0   :  { %8 = vsyncpa [#allocation3], 0  ;;  %s834_s0 = inlined_call_operand.hbm [shape: f32[2,2,4,256], index: 0, kind: input, shape index: {}]   ;;  %s835_s1 = inlined_call_operand.hbm [shape: f32[2,4,128], index: 1, kind: output, shape index: {0}]   ;;  %s836_s2 = inlined_call_operand.hbm [shape: f32[2,4,128], index: 2, kind: output, shape index: {1}]  }
   0x1   :  { %10 = vsyncpa [#allocation3 + $0x1], 0 }
   0x2   :  { %11 = vsyncpa [#allocation4], 0 }
   0x3   :  { %13 = vsyncpa [#allocation4 + $0x1], 0 }
   0x4   :  { %14 = vsyncpa [#allocation7], 0 }
   0x5   :  { %16 = vsyncpa [#allocation7 + $0x1], 0  ;;  %s641_s9 = smov 0   ;;  %s643_s10 = smov 0  }
   0x6   :  { %s645_s11 = smov 0   ;;  %s647_s12 = smov 0  }
   0x7   :  { %s649_s13 = smov 0   ;;  %s651_s14 = smov 0  }
   0x8 LB: > { %s392_s15 = sadd.s32 4294967295, %s618_s14   ;;  %s393_s16 = sadd.s32 4294967294, %s618_s14   ;;  %s618_s14 = sphi %s651_s14, %s22_s14   ;;  %s614_s13 = sphi %s649_s13, %s847_s13   ;;  %s610_s12 = sphi %s647_s12, %s846_s12   ;;  %s606_s11 = sphi %s645_s11, %s845_s11   ;;  %s602_s10 = sphi %s643_s10, %s844_s10   ;;  %s598_s9 = sphi %s641_s9, %s843_s9  }
   0x9   : > { %s41_s17 = sadd.s32 1, %s614_s13  ;;  %s52_s18 = sadd.s32 1, %s606_s11 }
   0xa   : > { %p43_p0 = scmp.ge.s32.totalorder %s41_s17, 2  ;;  %p59_p1 = scmp.ne.s32.totalorder %s606_s11, %s602_s10 }
   0xb   : > { %p60_p2 = scmp.eq.s32.totalorder %s618_s14, 0  ;;  %p65_p3 = scmp.ne.s32.totalorder %s602_s10, %s598_s9 }
   0xc   : > { %s849_s17 = smov (%p43_p0, %s41_s17), 0  ;;  %p66_p5 = scmp.eq.s32.totalorder %s392_s15, 0 }
   0xd   : > { %p682_p4 = por %p60_p2, %p59_p1  ;;  %s45_s20 = ssub.s32 %s614_s13, %s849_s17 }
   0xe   : > { %p89_p6 = scmp.eq.s32.totalorder %s392_s15, 1  ;;  %p50_p7 = scmp.eq.s32.totalorder %s45_s20, 0 }
   0xf   : > { %p688_p8 = por %p66_p5, %p65_p3  ;;  %p95_p10 = scmp.eq.s32.totalorder %s393_s16, 1 }
  0x10   : > { %p692_p9 = por %p89_p6, %p59_p1  ;;  %p427_p13 = scmp.lt.s32.totalorder %s618_s14, 2 }
  0x11   : > { %s697_s23 = scalar_select %p50_p7, %s606_s11, %s52_s18  }
  0x12   : > { %p699_p11 = por %p95_p10, %p65_p3  ;;  %s141_s25 = sand.u32 1, %s606_s11  }
  0x13   : > { %s396_s26 = sshll.u32 %s141_s25, 4  ;;  %s409_s27 = sshll.u32 %s614_s13, 8 }
  0x14   : > { %s156_s30 = scalar_lea.hbm %s834_s0, %s409_s27  ;;  %s145_s3 = scalar_lea.vmem [#allocation2], %s396_s26 }
  0x15   : > { %s157_s4 = sshll.u32 %s145_s3, 4  ;;  %p712_p0 = pnand %p427_p13, %p682_p4  ;;  %s158_s4 = int_to_ptr.vmem [resolvable:$true] %s157_s4 }
  0x16   : > { %p399_p1 = scmp.ge.s32.totalorder %s618_s14, 1  ;;  %s142_s6 = scalar_lea.sflag [#allocation3], %s141_s25 }
  0x17   : > { %p482_p2 = pneg %p712_p0  ;;  %s493_s7 = scalar_lea.vmem %s158_s4, 256 }
  0x18   : > { %p494_p3 = scmp.ne.s32.totalorder %s158_s4, %s493_s7  ;;  %s620_s8 = smov [#allocation2]  }
  0x19   : > { %s498_s15 = sshll.u32 %s620_s8, 4  ;;  %s499_s15 = int_to_ptr.vmem [resolvable:$false] %s498_s15 }
  0x1a   : > { %p496_p5 = pnand %p494_p3, %p482_p2  ;;  %s500_s16 = scalar_lea.vmem %s499_s15, 512 }
  0x1b   : > { %p501_p7 = scmp.lt.s32.totalorder %s158_s4, %s499_s15  ;;  %p502_p10 = scmp.lt.s32.totalorder %s500_s16, %s493_s7 }
  0x1c   : > { %p497_p6 = pneg %p496_p5 }
  0x1d   : > { %p503_p12 = por %p502_p10, %p501_p7 }
  0x1f   : > { %p504_p4 = pnand %p503_p12, %p497_p6 }
  0x21   : > { %507 = shalt.err (!%p504_p4)
}
  0x22   : > { %s621_s18 = smov 128   ;;  %s622_s19 = smov 8  }
  0x23   : > { %419 = dma.hbm_to_vmem [thread:$0]  (!%p712_p0), %s156_s30, 256, %s158_s4, %s142_s6, %s621_s18, %s621_s18, %s622_s19  }
  0x24   : > { %p165_p13 = scmp.lt.s32.totalorder %s618_s14, 3 }
  0x26   : > { %p166_p2 = pnand %p399_p1, %p165_p13 }
  0x27   : > { %s725_s20 = sand.u32 (!%p166_p2), 1, %s602_s10  }
  0x28   : > { %169 = sbr.rel (%p166_p2) target bundleno = 95 (0x5f), region = 24  ;;  %s400_s25 = sshll.u32 (!%p166_p2), %s725_s20, 4 }
  0x29   : > { %s172_s26 = scalar_lea.sflag (!%p166_p2), [#allocation3], %s725_s20  ;;  %s175_s27 = scalar_lea.vmem (!%p166_p2), [#allocation2], %s400_s25 }
  0x2d   : > { %585 = dma.done.wait (%p688_p8), %s172_s26, 256  }
  0x2e   : > { %587 = vsyncadd (%p688_p8), %s172_s26, 4294967040  ;;  %s401_s28 = sshll.u32 %s725_s20, 2  ;;  %v623_v0 = vmov 0.0   ;;  %vm213_vm0 = vcmask 1043456   ;;  %v211_v1 = vld [vmem:[%s175_s27] sm:$0xf] }
  0x2f   : > { %s734_s29 = scalar_lea.vmem [#allocation5], %s401_s28  ;;  %s737_s30 = scalar_lea.vmem [#allocation6], %s401_s28  ;;  %v212_v2 = vld [vmem:[%s175_s27 + $0x8] sm:$0xf]  ;;  %v224_v3 = vld [vmem:[%s175_s27 + $0x4] sm:$0xf]  ;;  %v218_v8 = vmul.f32 %v211_v1, %v211_v1 }
  0x30   : > { %209 = vst [vmem:[%s734_s29] sm:$0xf] %v623_v0  ;;  %210 = vst [vmem:[%s737_s30] sm:$0xf] %v623_v0  ;;  %v214_v4 = vsel %vm213_vm0, %v211_v1, 0.0  ;;  %v215_v5 = vsel %vm213_vm0, %v212_v2, 0.0  ;;  %v225_v6 = vld [vmem:[%s175_s27 + $0xc] sm:$0xf]  ;;  %v219_v11 = vmul.f32 %v212_v2, %v212_v2  ;;  %v230_v12 = vmul.f32 %v224_v3, %v224_v3 }
  0x31   : > { %v226_v7 = vsel %vm213_vm0, %v224_v3, 0.0  ;;  %v216_v9 = vadd.f32 %v215_v5, %v214_v4  ;;  %v227_v10 = vsel %vm213_vm0, %v225_v6, 0.0  ;;  %v220_v14 = vsel %vm213_vm0, %v218_v8, 0.0  ;;  %s405_s21 = sshll.u32 %s610_s12, 6  ;;  %s261_s3 = sshll.u32 %s734_s29, 4  ;;  %s758_s3 = int_to_ptr.vmem [resolvable:$true] %s261_s3 }
  0x32   : > { %v228_v13 = vadd.f32 %v227_v10, %v226_v7  ;;  %v231_v15 = vmul.f32 %v225_v6, %v225_v6  ;;  %v221_v17 = vsel %vm213_vm0, %v219_v11, 0.0  ;;  %v232_v18 = vsel %vm213_vm0, %v230_v12, 0.0  ;;  %s274_s4 = sshll.u32 %s737_s30, 4  ;;  %s756_s7 = scalar_lea.hbm %s835_s1, %s405_s21  ;;  %s766_s4 = int_to_ptr.vmem [resolvable:$true] %s274_s4 }
  0x33   : > { %v222_v20 = vadd.f32 %v221_v17, %v220_v14  ;;  %s764_s15 = scalar_lea.hbm %s836_s2, %s405_s21  ;;  %s243_s16 = scalar_lea.sflag [#allocation4], %s725_s20 }
  0x34   : > { %v229_v19 = vadd.f32 %v228_v13, %v216_v9  ;;  %v233_v21 = vsel %vm213_vm0, %v231_v15, 0.0  ;;  %s508_s18 = scalar_lea.vmem %s758_s3, 64  ;;  %s624_s19 = smov [#allocation5]  }
  0x35   : > { %v234_v22 = vadd.f32 %v233_v21, %v232_v18  ;;  %p509_p8 = scmp.ne.s32.totalorder %s758_s3, %s508_s18  ;;  %s512_s25 = sshll.u32 %s624_s19, 4  ;;  %s513_s25 = int_to_ptr.vmem [resolvable:$false] %s512_s25 }
  0x36   : > { %s514_s26 = scalar_lea.vmem %s513_s25, 128  ;;  %p515_p1 = scmp.lt.s32.totalorder %s758_s3, %s513_s25 }
  0x37   : > { %v236_v16 = vld [vmem:[%s734_s29] sm:$0xf]  ;;  %v239_v24 = vld [vmem:[%s737_s30] sm:$0xf]  ;;  %v235_v25 = vadd.f32 %v234_v22, %v222_v20  ;;  %p510_p12 = pnand %p509_p8, %p692_p9  ;;  %p516_p3 = scmp.lt.s32.totalorder %s514_s26, %s508_s18 }
  0x38   : > { %v237_v23 = vadd.f32 %v236_v16, %v229_v19 }
  0x39   : > { %v240_v26 = vadd.f32 %v239_v24, %v235_v25  ;;  %p511_p0 = pneg %p510_p12  ;;  %p517_p5 = por %p516_p3, %p515_p1 }
  0x3a   : > { %238 = vst [vmem:[%s734_s29] sm:$0xf] %v237_v23 }
  0x3b   : > { %p518_p6 = pnand %p517_p5, %p511_p0 }
  0x3d   : > { %521 = shalt.err (!%p518_p6)
}
  0x3e   : > { %s522_s27 = scalar_lea.hbm %s756_s7, 64  ;;  %s526_s21 = scalar_lea.hbm %s835_s1, 128 }
  0x3f   : > { %p523_p7 = scmp.ne.s32.totalorder %s756_s7, %s522_s27  ;;  %p527_p13 = scmp.lt.s32.totalorder %s756_s7, %s835_s1 }
  0x40   : > { %p528_p2 = scmp.lt.s32.totalorder %s526_s21, %s522_s27 }
  0x41   : > { %p524_p10 = pnand %p523_p7, %p692_p9 }
  0x42   : > { %p529_p8 = por %p528_p2, %p527_p13 }
  0x43   : > { %p525_p4 = pneg %p524_p10 }
  0x45   : > { %p530_p12 = pnand %p529_p8, %p525_p4 }
  0x47   : > { %533 = shalt.err (!%p530_p12)
}
  0x48   : > { %412 = dma.vmem_to_hbm [thread:$0]  (%p692_p9), %s758_s3, 64, %s756_s7, %s243_s16   ;;  %241 = vst [vmem:[%s737_s30] sm:$0xf] %v240_v26 }
  0x49   : > { %s248_s12 = scalar_lea.sflag [#allocation7], %s725_s20  ;;  %s534_s8 = scalar_lea.vmem %s766_s4, 64 }
  0x4a   : > { %p535_p0 = scmp.ne.s32.totalorder %s766_s4, %s534_s8  ;;  %s625_s18 = smov [#allocation6]  }
  0x4b   : > { %s538_s19 = sshll.u32 %s625_s18, 4  ;;  %s539_s19 = int_to_ptr.vmem [resolvable:$false] %s538_s19 }
  0x4c   : > { %p536_p1 = pnand %p535_p0, %p692_p9  ;;  %s540_s25 = scalar_lea.vmem %s539_s19, 128 }
  0x4d   : > { %p541_p5 = scmp.lt.s32.totalorder %s766_s4, %s539_s19  ;;  %p542_p6 = scmp.lt.s32.totalorder %s540_s25, %s534_s8 }
  0x4e   : > { %p537_p3 = pneg %p536_p1 }
  0x4f   : > { %p543_p7 = por %p542_p6, %p541_p5 }
  0x51   : > { %p544_p10 = pnand %p543_p7, %p537_p3 }
  0x53   : > { %547 = shalt.err (!%p544_p10)
}
  0x54   : > { %s548_s30 = scalar_lea.hbm %s764_s15, 64  ;;  %s552_s7 = scalar_lea.hbm %s836_s2, 128 }
  0x55   : > { %p549_p4 = scmp.ne.s32.totalorder %s764_s15, %s548_s30  ;;  %p553_p8 = scmp.lt.s32.totalorder %s764_s15, %s836_s2 }
  0x56   : > { %p554_p12 = scmp.lt.s32.totalorder %s552_s7, %s548_s30 }
  0x57   : > { %p550_p13 = pnand %p549_p4, %p692_p9 }
  0x58   : > { %p555_p0 = por %p554_p12, %p553_p8 }
  0x59   : > { %p551_p2 = pneg %p550_p13 }
  0x5b   : > { %p556_p1 = pnand %p555_p0, %p551_p2 }
  0x5d   : > { %559 = shalt.err (!%p556_p1)
}
  0x5e   : > { %413 = dma.vmem_to_hbm [thread:$0]  (%p692_p9), %s766_s4, 64, %s764_s15, %s248_s12  }
  0x5f PF: > { %s286_s27 = sand.u32 1, %s598_s9   ;;  %p842_p3 = scmp.ge.s32.totalorder %s618_s14, 2 }
  0x60   : > { %s287_s28 = scalar_lea.sflag [#allocation4], %s286_s27 }
  0x61   : > { %p421_p5 = pnand %p842_p3, %p699_p11 }
  0x63   : > { %p422_p6 = pneg %p421_p5 }
  0x65   : > { %589 = dma.done.wait (%p422_p6), %s287_s28, 64  }
  0x66   : > { %591 = vsyncadd (%p422_p6), %s287_s28, 4294967232  ;;  %s296_s29 = scalar_lea.sflag [#allocation7], %s286_s27 }
  0x67   : > { %593 = dma.done.wait (%p422_p6), %s296_s29, 64  }
  0x68   : > { %595 = vsyncadd (%p422_p6), %s296_s29, 4294967232  ;;  %s22_s14 = sadd.s32 1, %s618_s14   ;;  %s843_s9 = smov %s602_s10 }
  0x69   : > { %p19_p7 = scmp.ge.s32.totalorder %s22_s14, 4   ;;  %s844_s10 = smov %s606_s11 }
  0x6a   : > { %s845_s11 = smov %s697_s23  ;;  %s846_s12 = smov %s614_s13 }
  0x6b   : > { %s847_s13 = smov %s849_s17  ;;  %21 = sbr.rel (!%p19_p7) target bundleno = 8 (0x8), region = 90 }
  0x70   :  { %301 = vsyncpa [#allocation3], 1 }
  0x71   :  { %303 = vsyncpa [#allocation3 + $0x1], 1 }
  0x72   :  { %304 = vsyncpa [#allocation4], 1 }
  0x73   :  { %306 = vsyncpa [#allocation4 + $0x1], 1 }
  0x74   :  { %307 = vsyncpa [#allocation7], 1 }
  0x75   :  { %309 = vsyncpa [#allocation7 + $0x1], 1 }

</bundles_post_ra>
